<compile_context>
chip_gen: v7x
topology: tpu7x:2x2x1
jax: 0.10.0
libtpu: 0.0.40
codegen_flags: <defaults>
</compile_context>

<pallas_src>
import functools

import jax
import jax.numpy as jnp
from jax.experimental import pallas as pl
from jax.experimental.pallas import tpu as pltpu


# ----------------------------------------------------------------------------
# Pallas kernel 1: fused im2col-matmul conv (single MXU matmul, lane-dense out)
# ----------------------------------------------------------------------------
def _conv_mm_kernel(p_ref, w_ref, b_ref, o_ref, *, apply_relu):
    # p_ref: (1, TP, K)    bf16 im2col patches for TP output pixels of one image
    # w_ref: (Cout, K)     bf16 flattened weights (transposed)
    # b_ref: (Cout, 1)     f32 bias
    # o_ref: (1, Cout, TP) f32, lane-dense (TP on the 128-lane axis)
    acc = jax.lax.dot_general(
        w_ref[...], p_ref[0],
        dimension_numbers=(((1,), (1,)), ((), ())),   # contract K with K ("NT")
        preferred_element_type=jnp.float32)           # (Cout, TP), f32 accum
    acc = acc + b_ref[...]                            # (Cout, 1) broadcast
    if apply_relu:
        acc = jnp.maximum(acc, 0.0)
    o_ref[0] = acc


def _pick_row_tile(P):
    # Largest pixel tile that keeps the out minor dim a multiple of 128
    # (unmasked stores) and blocks comfortably inside scoped VMEM.
    for t in (512, 256, 128):
        if P % t == 0:
            return t
    return P  # fall back to "full" (always legal)


def _im2col(x_nhwc_bf16, KH, KW):
    """(B,H,W,C) -> (B, H*W, KH*KW*C) patch matrix, 'same' padding, stride 1."""
    B, H, W, C = x_nhwc_bf16.shape
    ph, pw = KH // 2, KW // 2
    xp = jnp.pad(x_nhwc_bf16, ((0, 0), (ph, ph), (pw, pw), (0, 0)))
    cols = []
    for kh in range(KH):
        for kw in range(KW):
            cols.append(xp[:, kh:kh + H, kw:kw + W, :])
    patches = jnp.concatenate(cols, axis=-1)          # (B, H, W, KH*KW*C)
    return patches.reshape(B, H * W, KH * KW * C)


def conv2d_same_pallas(x_nhwc, w_hwio, bias, apply_relu=False):
    """stride-1 'same' conv.  Input NHWC, output NCHW-flat (B, Cout, H*W)."""
    B, H, W, Cin = x_nhwc.shape
    KH, KW, Cin2, Cout = w_hwio.shape
    assert Cin == Cin2 and KH % 2 == 1 and KW % 2 == 1
    K = KH * KW * Cin
    P = H * W

    patches = _im2col(x_nhwc.astype(jnp.bfloat16), KH, KW)           # (B,P,K) bf16
    wT = jnp.transpose(w_hwio.astype(jnp.float32).reshape(K, Cout)
                       ).astype(jnp.bfloat16)                        # (Cout, K)
    b2 = bias.reshape(Cout, 1).astype(jnp.float32)

    TP = _pick_row_tile(P)
    grid = (B, P // TP)

    cost = pl.CostEstimate(
        flops=2 * B * P * K * Cout,
        transcendentals=0,
        bytes_accessed=B * P * K * 2 + Cout * K * 2 + B * Cout * P * 4 + Cout * 4)

    kernel = functools.partial(_conv_mm_kernel, apply_relu=apply_relu)
    out = pl.pallas_call(
        kernel,
        out_shape=jax.ShapeDtypeStruct((B, Cout, P), jnp.float32),
        grid=grid,
        in_specs=[
            pl.BlockSpec((1, TP, K), lambda b, t: (b, t, 0)),
            pl.BlockSpec((Cout, K), lambda b, t: (0, 0)),
            pl.BlockSpec((Cout, 1), lambda b, t: (0, 0)),
        ],
        out_specs=pl.BlockSpec((1, Cout, TP), lambda b, t: (b, 0, t)),
        compiler_params=pltpu.CompilerParams(
            dimension_semantics=("parallel", "parallel")),
        cost_estimate=cost,
    )(patches, wT, b2)
    return out  # (B, Cout, H*W)


# ----------------------------------------------------------------------------
# Pallas kernel 2: grid_sample (bilinear, zeros padding), separable & vectorized
#   out[c,p] = sum_y Wy[p,y] * ( sum_x src[c,y,x] * Wx[p,x] )
# Stage 1: MXU matmul (C*H, W) @ (W, P)  -> (C*H, P)    (P lane-dense)
# Stage 2: VPU multiply by Wy^T (H, P) + sublane reduction over y -> (C, P)
# Zero-padding: OOB corners get zero weight in Wx / Wy (built in the wrapper),
# which reproduces F.grid_sample(..., padding_mode='zeros') exactly.
# ----------------------------------------------------------------------------
def _grid_sample_kernel(src_ref, wxT_ref, wyT_ref, o_ref, *, C, H):
    # src_ref: (1, C*H, W) f32   channel-major source image of this batch
    # wxT_ref: (1, W, P)   f32   x-axis interpolation weights (transposed)
    # wyT_ref: (1, H, P)   f32   y-axis interpolation weights (transposed)
    # o_ref:   (1, C, P)   f32   lane-dense output (P on the lane axis)
    a = jnp.dot(src_ref[0], wxT_ref[0],
                preferred_element_type=jnp.float32)       # (C*H, P)
    P = a.shape[-1]
    a = a.reshape(C, H, P)                                # split sublane dim
    o_ref[0] = jnp.sum(a * wyT_ref[...], axis=1)          # (C, P)


def grid_sample_bilinear_zeros_nchw(h_nchw, flow_nchw):
    """F.grid_sample(h, grid + flow, bilinear, zeros, align_corners=False).

    h_nchw:    (B, C, H, W)
    flow_nchw: (B, 2, H, W)  channel 0 = x-flow, channel 1 = y-flow
    returns    (B, C, H*W)   flattened NCHW result.
    """
    B, C, H, W = h_nchw.shape
    P = H * W

    gy, gx = jnp.meshgrid(jnp.arange(H, dtype=jnp.float32),
                          jnp.arange(W, dtype=jnp.float32), indexing='ij')
    vx = gx[None] + flow_nchw[:, 0]                       # (B, H, W)
    vy = gy[None] + flow_nchw[:, 1]
    # normalize to [-1, 1] (as the module does) ...
    vxn = 2.0 * vx / max(W - 1, 1) - 1.0
    vyn = 2.0 * vy / max(H - 1, 1) - 1.0
    # ... then un-normalize like grid_sample (align_corners=False default).
    ix = ((vxn + 1.0) * W - 1.0) * 0.5
    iy = ((vyn + 1.0) * H - 1.0) * 0.5

    def axis_weight_matrix(coord, size):
        # coord (B, H, W) -> per-output-pixel 1-D interpolation weights
        # (B, P, size); out-of-bounds corners get zero weight.
        c0 = jnp.floor(coord)
        frac = coord - c0
        c0i = c0.astype(jnp.int32)
        c1i = c0i + 1

        def contrib(ci, w):
            valid = (ci >= 0) & (ci < size)
            cc = jnp.clip(ci, 0, size - 1)
            return (jax.nn.one_hot(cc, size, dtype=jnp.float32)
                    * jnp.where(valid, w, 0.0)[..., None])

        Wm = contrib(c0i, 1.0 - frac) + contrib(c1i, frac)   # (B, H, W, size)
        return Wm.reshape(B, P, size)

    wxT = jnp.transpose(axis_weight_matrix(ix, W), (0, 2, 1))   # (B, W, P)
    wyT = jnp.transpose(axis_weight_matrix(iy, H), (0, 2, 1))   # (B, H, P)
    src = h_nchw.reshape(B, C * H, W).astype(jnp.float32)       # free reshape

    cost = pl.CostEstimate(
        flops=2 * B * C * H * W * P + 2 * B * C * H * P,
        transcendentals=0,
        bytes_accessed=(B * C * H * W + B * (W + H) * P + B * C * P) * 4)

    kernel = functools.partial(_grid_sample_kernel, C=C, H=H)
    out = pl.pallas_call(
        kernel,
        out_shape=jax.ShapeDtypeStruct((B, C, P), jnp.float32),
        grid=(B,),
        in_specs=[
            pl.BlockSpec((1, C * H, W), lambda b: (b, 0, 0)),
            pl.BlockSpec((1, W, P), lambda b: (b, 0, 0)),
            pl.BlockSpec((1, H, P), lambda b: (b, 0, 0)),
        ],
        out_specs=pl.BlockSpec((1, C, P), lambda b: (b, 0, 0)),
        compiler_params=pltpu.CompilerParams(dimension_semantics=("parallel",)),
        cost_estimate=cost,
    )(src, wxT, wyT)
    return out  # (B, C, H*W)


# ----------------------------------------------------------------------------
# Glue: bilinear resize (matches torch F.interpolate bilinear, both AC modes)
# ----------------------------------------------------------------------------
def _interp_matrix(in_size, out_size, align_corners):
    d = jnp.arange(out_size, dtype=jnp.float32)
    if align_corners:
        if out_size > 1:
            src = d * (in_size - 1) / (out_size - 1)
        else:
            src = jnp.zeros((out_size,), jnp.float32)
    else:
        scale = in_size / out_size
        src = (d + 0.5) * scale - 0.5
        src = jnp.maximum(src, 0.0)          # PyTorch clamps negative source idx
    x0 = jnp.clip(jnp.floor(src).astype(jnp.int32), 0, in_size - 1)
    x1 = jnp.minimum(x0 + 1, in_size - 1)
    w1 = jnp.clip(src - x0.astype(jnp.float32), 0.0, 1.0)
    w0 = 1.0 - w1
    M = (jax.nn.one_hot(x0, in_size, dtype=jnp.float32) * w0[:, None]
         + jax.nn.one_hot(x1, in_size, dtype=jnp.float32) * w1[:, None])
    return M  # (out_size, in_size)


def bilinear_resize_nchw(x, out_h, out_w, align_corners):
    B, C, H, W = x.shape
    Ry = _interp_matrix(H, out_h, align_corners)   # (out_h, H)
    Rx = _interp_matrix(W, out_w, align_corners)   # (out_w, W)
    x = jnp.einsum('oh,bchw->bcow', Ry, x)
    x = jnp.einsum('pw,bcow->bcop', Rx, x)
    return x


# ----------------------------------------------------------------------------
# RDC forward (decoder='vanilla')
# ----------------------------------------------------------------------------
def rdc_vanilla_forward(x_cur_nchw, h_pre_nchw, params):
    x = x_cur_nchw.astype(jnp.float32)       # (B, C, Hx, Wx)
    h = h_pre_nchw.astype(jnp.float32)       # (B, C, Hh, Wh)
    B, C, Hx, Wx = x.shape
    _, _, Hh, Wh = h.shape

    # ---- _flow_align_module(x_cur, h_pre) ----
    h_up = bilinear_resize_nchw(h, Hx, Wx, align_corners=False)       # F.upsample default
    fuse = jnp.concatenate([x, h_up], axis=1)                         # (B, 2C, Hx, Wx)
    fuse_nhwc = jnp.transpose(fuse, (0, 2, 3, 1))
    flow_flat = conv2d_same_pallas(fuse_nhwc, params['flow_w'], params['flow_b'],
                                   apply_relu=False)                  # (B, 2, Hx*Wx)
    flow = bilinear_resize_nchw(flow_flat.reshape(B, 2, Hx, Wx),
                                Hh, Wh, align_corners=False)          # (B, 2, Hh, Wh)
    h_aligned_flat = grid_sample_bilinear_zeros_nchw(h, flow)         # (B, C, Hh*Wh)
    h_aligned = h_aligned_flat.reshape(B, C, Hh, Wh)

    # ---- rest of forward ----
    h_pre_up = bilinear_resize_nchw(h_aligned, Hx, Wx, align_corners=True)
    combined = jnp.concatenate([h_pre_up, x], axis=1)                 # (B, 2C, Hx, Wx)
    combined_nhwc = jnp.transpose(combined, (0, 2, 3, 1))
    out_flat = conv2d_same_pallas(combined_nhwc, params['van_w'], params['van_b'],
                                  apply_relu=True)                    # (B, C, Hx*Wx)
    return out_flat.reshape(B, C, Hx, Wx)                             # NCHW directly


# ----------------------------------------------------------------------------
# Demo
# ----------------------------------------------------------------------------
if __name__ == "__main__":
    hidden_dim = 4
    kernel_size = 3
    B, Hx, Wx = 2, 16, 16
    Hh, Wh = 8, 8

    key = jax.random.PRNGKey(0)
    k = jax.random.split(key, 6)

    x_cur = jax.random.normal(k[0], (B, hidden_dim, Hx, Wx), jnp.float32)
    h_pre = jax.random.normal(k[1], (B, hidden_dim, Hh, Wh), jnp.float32)

    # Deterministic parameter init (shapes from RDC.__init__); OIHW -> HWIO.
    van_w_oihw = 0.1 * jax.random.normal(k[2], (hidden_dim, 2 * hidden_dim,
                                                kernel_size, kernel_size), jnp.float32)
    van_b = 0.05 * jax.random.normal(k[3], (hidden_dim,), jnp.float32)
    flow_w_oihw = 0.1 * jax.random.normal(k[4], (2, 2 * hidden_dim, 3, 3), jnp.float32)
    flow_b = 0.05 * jax.random.normal(k[5], (2,), jnp.float32)

    params = dict(
        van_w=jnp.transpose(van_w_oihw, (2, 3, 1, 0)),
        van_b=van_b,
        flow_w=jnp.transpose(flow_w_oihw, (2, 3, 1, 0)),
        flow_b=flow_b,
    )

    fwd = jax.jit(rdc_vanilla_forward)
    out = fwd(x_cur, h_pre, params)
    jax.block_until_ready(out)
    assert out.shape == (B, hidden_dim, Hx, Wx), out.shape
    print("KERNEL_OK")
</pallas_src>

<mosaic_0001>
module attributes {stable_mosaic.version = 11 : i64} {
  func.func @_conv_mm_kernel(%arg0: i32, %arg1: i32, %arg2: memref<1x256x72xbf16, #tpu.memory_space<vmem>>, %arg3: memref<2x72xbf16, #tpu.memory_space<vmem>>, %arg4: memref<2x1xf32, #tpu.memory_space<vmem>>, %arg5: memref<1x2x256xf32, #tpu.memory_space<vmem>>) attributes {dimension_semantics = [#tpu.dimension_semantics<parallel>, #tpu.dimension_semantics<parallel>], iteration_bounds = array<i64: 2, 1>, scalar_prefetch = 0 : i64, scratch_operands = 0 : i64, tpu.core_type = #tpu.core_type<tc>, window_params = [{transform_indices = @transform_0, window_bounds = array<i64: 1, 256, 72>}, {pipeline_mode = #tpu.pipeline_mode<synchronous>, transform_indices = @transform_1, window_bounds = array<i64: 2, 72>}, {pipeline_mode = #tpu.pipeline_mode<synchronous>, transform_indices = @transform_2, window_bounds = array<i64: 2, 1>}, {transform_indices = @transform_3, window_bounds = array<i64: 1, 2, 256>}]} {
    %c0 = arith.constant 0 : index
    %c0_0 = arith.constant 0 : index
    %0 = vector.load %arg3[%c0, %c0_0] : memref<2x72xbf16, #tpu.memory_space<vmem>>, vector<2x72xbf16>
    %c0_1 = arith.constant 0 : index
    %c0_2 = arith.constant 0 : index
    %c0_3 = arith.constant 0 : index
    %1 = vector.load %arg2[%c0_1, %c0_2, %c0_3] : memref<1x256x72xbf16, #tpu.memory_space<vmem>>, vector<1x256x72xbf16>
    %2 = vector.shape_cast %1 : vector<1x256x72xbf16> to vector<256x72xbf16>
    %cst = arith.constant dense<0.000000e+00> : vector<2x256xf32>
    %3 = tpu.matmul %0, %2, %cst {dimension_numbers = #tpu.dot_dimension_numbers<[1], [1], [0], [0], [0, 0, 1, 0], [], []>} : vector<2x72xbf16>, vector<256x72xbf16>, vector<2x256xf32> -> vector<2x256xf32>
    %c0_4 = arith.constant 0 : index
    %c0_5 = arith.constant 0 : index
    %4 = vector.load %arg4[%c0_4, %c0_5] : memref<2x1xf32, #tpu.memory_space<vmem>>, vector<2x1xf32>
    %5 = vector.broadcast %4 : vector<2x1xf32> to vector<2x256xf32>
    %6 = arith.addf %3, %5 : vector<2x256xf32>
    %c0_6 = arith.constant 0 : index
    %c0_7 = arith.constant 0 : index
    %c0_8 = arith.constant 0 : index
    %7 = vector.load %arg5[%c0_6, %c0_7, %c0_8] : memref<1x2x256xf32, #tpu.memory_space<vmem>>, vector<1x2x256xf32>
    %8 = vector.shape_cast %7 : vector<1x2x256xf32> to vector<2x256xf32>
    %9 = vector.shape_cast %6 : vector<2x256xf32> to vector<1x2x256xf32>
    tpu.vector_store %arg5[%c0_6, %c0_7, %c0_8], %9 {strides = array<i32>} : memref<1x2x256xf32, #tpu.memory_space<vmem>>, vector<1x2x256xf32>,
    return
  }
  func.func @transform_0(%arg0: i32, %arg1: i32) -> (i32, i32, i32) {
    %c0_i32 = arith.constant 0 : i32
    %c0_i32_0 = arith.constant 0 : i32
    return %arg0, %arg1, %c0_i32 : i32, i32, i32
  }
  func.func @transform_1(%arg0: i32, %arg1: i32) -> (i32, i32) {
    %c0_i32 = arith.constant 0 : i32
    %c0_i32_0 = arith.constant 0 : i32
    %c0_i32_1 = arith.constant 0 : i32
    return %c0_i32, %c0_i32_0 : i32, i32
  }
  func.func @transform_2(%arg0: i32, %arg1: i32) -> (i32, i32) {
    %c0_i32 = arith.constant 0 : i32
    %c0_i32_0 = arith.constant 0 : i32
    %c0_i32_1 = arith.constant 0 : i32
    return %c0_i32, %c0_i32_0 : i32, i32
  }
  func.func @transform_3(%arg0: i32, %arg1: i32) -> (i32, i32, i32) {
    %c0_i32 = arith.constant 0 : i32
    %c0_i32_0 = arith.constant 0 : i32
    return %arg0, %c0_i32, %arg1 : i32, i32, i32
  }
}

module attributes {stable_mosaic.version = 11 : i64} {
  func.func @_grid_sample_kernel(%arg0: i32, %arg1: memref<1x32x8xf32, #tpu.memory_space<vmem>>, %arg2: memref<1x8x64xf32, #tpu.memory_space<vmem>>, %arg3: memref<1x8x64xf32, #tpu.memory_space<vmem>>, %arg4: memref<1x4x64xf32, #tpu.memory_space<vmem>>) attributes {dimension_semantics = [#tpu.dimension_semantics<parallel>], iteration_bounds = array<i64: 2>, scalar_prefetch = 0 : i64, scratch_operands = 0 : i64, tpu.core_type = #tpu.core_type<tc>, window_params = [{transform_indices = @transform_0, window_bounds = array<i64: 1, 32, 8>}, {transform_indices = @transform_1, window_bounds = array<i64: 1, 8, 64>}, {transform_indices = @transform_2, window_bounds = array<i64: 1, 8, 64>}, {transform_indices = @transform_3, window_bounds = array<i64: 1, 4, 64>}]} {
    %c0 = arith.constant 0 : index
    %c0_0 = arith.constant 0 : index
    %c0_1 = arith.constant 0 : index
    %0 = vector.load %arg1[%c0, %c0_0, %c0_1] : memref<1x32x8xf32, #tpu.memory_space<vmem>>, vector<1x32x8xf32>
    %1 = vector.shape_cast %0 : vector<1x32x8xf32> to vector<32x8xf32>
    %c0_2 = arith.constant 0 : index
    %c0_3 = arith.constant 0 : index
    %c0_4 = arith.constant 0 : index
    %2 = vector.load %arg2[%c0_2, %c0_3, %c0_4] : memref<1x8x64xf32, #tpu.memory_space<vmem>>, vector<1x8x64xf32>
    %3 = vector.shape_cast %2 : vector<1x8x64xf32> to vector<8x64xf32>
    %cst = arith.constant dense<0.000000e+00> : vector<32x64xf32>
    %4 = tpu.matmul %1, %3, %cst {dimension_numbers = #tpu.dot_dimension_numbers<[1], [0], [0], [1], [0, 0, 1, 1], [], []>} : vector<32x8xf32>, vector<8x64xf32>, vector<32x64xf32> -> vector<32x64xf32>
    %5 = vector.shape_cast %4 : vector<32x64xf32> to vector<4x8x64xf32>
    %c0_5 = arith.constant 0 : index
    %c0_6 = arith.constant 0 : index
    %c0_7 = arith.constant 0 : index
    %6 = vector.load %arg3[%c0_5, %c0_6, %c0_7] : memref<1x8x64xf32, #tpu.memory_space<vmem>>, vector<1x8x64xf32>
    %7 = vector.broadcast %6 : vector<1x8x64xf32> to vector<4x8x64xf32>
    %8 = arith.mulf %5, %7 : vector<4x8x64xf32>
    %cst_8 = arith.constant dense<0.000000e+00> : vector<4x64xf32>
    %9 = vector.multi_reduction <add>, %8, %cst_8 [1] : vector<4x8x64xf32> to vector<4x64xf32>
    %c0_9 = arith.constant 0 : index
    %c0_10 = arith.constant 0 : index
    %c0_11 = arith.constant 0 : index
    %10 = vector.load %arg4[%c0_9, %c0_10, %c0_11] : memref<1x4x64xf32, #tpu.memory_space<vmem>>, vector<1x4x64xf32>
    %11 = vector.shape_cast %10 : vector<1x4x64xf32> to vector<4x64xf32>
    %12 = vector.shape_cast %9 : vector<4x64xf32> to vector<1x4x64xf32>
    tpu.vector_store %arg4[%c0_9, %c0_10, %c0_11], %12 {strides = array<i32>} : memref<1x4x64xf32, #tpu.memory_space<vmem>>, vector<1x4x64xf32>,
    return
  }
  func.func @transform_0(%arg0: i32) -> (i32, i32, i32) {
    %c0_i32 = arith.constant 0 : i32
    %c0_i32_0 = arith.constant 0 : i32
    %c0_i32_1 = arith.constant 0 : i32
    return %arg0, %c0_i32, %c0_i32_0 : i32, i32, i32
  }
  func.func @transform_1(%arg0: i32) -> (i32, i32, i32) {
    %c0_i32 = arith.constant 0 : i32
    %c0_i32_0 = arith.constant 0 : i32
    %c0_i32_1 = arith.constant 0 : i32
    return %arg0, %c0_i32, %c0_i32_0 : i32, i32, i32
  }
  func.func @transform_2(%arg0: i32) -> (i32, i32, i32) {
    %c0_i32 = arith.constant 0 : i32
    %c0_i32_0 = arith.constant 0 : i32
    %c0_i32_1 = arith.constant 0 : i32
    return %arg0, %c0_i32, %c0_i32_0 : i32, i32, i32
  }
  func.func @transform_3(%arg0: i32) -> (i32, i32, i32) {
    %c0_i32 = arith.constant 0 : i32
    %c0_i32_0 = arith.constant 0 : i32
    %c0_i32_1 = arith.constant 0 : i32
    return %arg0, %c0_i32, %c0_i32_0 : i32, i32, i32
  }
}

module attributes {stable_mosaic.version = 11 : i64} {
  func.func @_conv_mm_kernel(%arg0: i32, %arg1: i32, %arg2: memref<1x256x72xbf16, #tpu.memory_space<vmem>>, %arg3: memref<4x72xbf16, #tpu.memory_space<vmem>>, %arg4: memref<4x1xf32, #tpu.memory_space<vmem>>, %arg5: memref<1x4x256xf32, #tpu.memory_space<vmem>>) attributes {dimension_semantics = [#tpu.dimension_semantics<parallel>, #tpu.dimension_semantics<parallel>], iteration_bounds = array<i64: 2, 1>, scalar_prefetch = 0 : i64, scratch_operands = 0 : i64, tpu.core_type = #tpu.core_type<tc>, window_params = [{transform_indices = @transform_0, window_bounds = array<i64: 1, 256, 72>}, {pipeline_mode = #tpu.pipeline_mode<synchronous>, transform_indices = @transform_1, window_bounds = array<i64: 4, 72>}, {pipeline_mode = #tpu.pipeline_mode<synchronous>, transform_indices = @transform_2, window_bounds = array<i64: 4, 1>}, {transform_indices = @transform_3, window_bounds = array<i64: 1, 4, 256>}]} {
    %c0 = arith.constant 0 : index
    %c0_0 = arith.constant 0 : index
    %0 = vector.load %arg3[%c0, %c0_0] : memref<4x72xbf16, #tpu.memory_space<vmem>>, vector<4x72xbf16>
    %c0_1 = arith.constant 0 : index
    %c0_2 = arith.constant 0 : index
    %c0_3 = arith.constant 0 : index
    %1 = vector.load %arg2[%c0_1, %c0_2, %c0_3] : memref<1x256x72xbf16, #tpu.memory_space<vmem>>, vector<1x256x72xbf16>
    %2 = vector.shape_cast %1 : vector<1x256x72xbf16> to vector<256x72xbf16>
    %cst = arith.constant dense<0.000000e+00> : vector<4x256xf32>
    %3 = tpu.matmul %0, %2, %cst {dimension_numbers = #tpu.dot_dimension_numbers<[1], [1], [0], [0], [0, 0, 1, 0], [], []>} : vector<4x72xbf16>, vector<256x72xbf16>, vector<4x256xf32> -> vector<4x256xf32>
    %c0_4 = arith.constant 0 : index
    %c0_5 = arith.constant 0 : index
    %4 = vector.load %arg4[%c0_4, %c0_5] : memref<4x1xf32, #tpu.memory_space<vmem>>, vector<4x1xf32>
    %5 = vector.broadcast %4 : vector<4x1xf32> to vector<4x256xf32>
    %6 = arith.addf %3, %5 : vector<4x256xf32>
    %cst_6 = arith.constant 0.000000e+00 : f32
    %7 = vector.broadcast %cst_6 : f32 to vector<4x256xf32>
    %8 = arith.maximumf %6, %7 : vector<4x256xf32>
    %c0_7 = arith.constant 0 : index
    %c0_8 = arith.constant 0 : index
    %c0_9 = arith.constant 0 : index
    %9 = vector.load %arg5[%c0_7, %c0_8, %c0_9] : memref<1x4x256xf32, #tpu.memory_space<vmem>>, vector<1x4x256xf32>
    %10 = vector.shape_cast %9 : vector<1x4x256xf32> to vector<4x256xf32>
    %11 = vector.shape_cast %8 : vector<4x256xf32> to vector<1x4x256xf32>
    tpu.vector_store %arg5[%c0_7, %c0_8, %c0_9], %11 {strides = array<i32>} : memref<1x4x256xf32, #tpu.memory_space<vmem>>, vector<1x4x256xf32>,
    return
  }
  func.func @transform_0(%arg0: i32, %arg1: i32) -> (i32, i32, i32) {
    %c0_i32 = arith.constant 0 : i32
    %c0_i32_0 = arith.constant 0 : i32
    return %arg0, %arg1, %c0_i32 : i32, i32, i32
  }
  func.func @transform_1(%arg0: i32, %arg1: i32) -> (i32, i32) {
    %c0_i32 = arith.constant 0 : i32
    %c0_i32_0 = arith.constant 0 : i32
    %c0_i32_1 = arith.constant 0 : i32
    return %c0_i32, %c0_i32_0 : i32, i32
  }
  func.func @transform_2(%arg0: i32, %arg1: i32) -> (i32, i32) {
    %c0_i32 = arith.constant 0 : i32
    %c0_i32_0 = arith.constant 0 : i32
    %c0_i32_1 = arith.constant 0 : i32
    return %c0_i32, %c0_i32_0 : i32, i32
  }
  func.func @transform_3(%arg0: i32, %arg1: i32) -> (i32, i32, i32) {
    %c0_i32 = arith.constant 0 : i32
    %c0_i32_0 = arith.constant 0 : i32
    return %arg0, %c0_i32, %arg1 : i32, i32, i32
  }
}

</mosaic_0001>

<bundles_post_ra>
// kernel: rdc_vanilla_forward.3
= control target key start
LH: loop header
LB: loop body
LE: loop exit
PB: predicated region body
PF: predicated region fallthrough
CT: control target
= control target key end

     0   :  { %s666_s12 = smov 0   ;;  %s668_s13 = smov 0   ;;  %s745_s0 = inlined_call_operand.vmem [shape: bf16[2,256,72], index: 0, kind: input, shape index: {}]   ;;  %s746_s1 = inlined_call_operand.vmem [shape: bf16[2,72], index: 1, kind: input, shape index: {}]   ;;  %s747_s2 = inlined_call_operand.vmem [shape: f32[2,1], index: 2, kind: input, shape index: {}]   ;;  %s748_s3 = inlined_call_operand.vmem [shape: f32[2,2,256], index: 3, kind: output, shape index: {}]  }
   0x1   :  { %s670_s14 = smov 0  }
   0x2 LB: > { %s25_s15 = sadd.s32 1, %s639_s13  ;;  %p526_p0 = scmp.ge.s32.totalorder %s643_s14, 1  ;;  %s643_s14 = sphi %s670_s14, %s13_s14   ;;  %s639_s13 = sphi %s668_s13, %s750_s13   ;;  %s635_s12 = sphi %s666_s12, %s749_s12  }
   0x3   : > { %p27_p1 = scmp.ge.s32.totalorder %s25_s15, 2  ;;  %p158_p2 = scmp.lt.s32.totalorder %s643_s14, 3 }
   0x5   : > { %s752_s15 = smov (%p27_p1, %s25_s15), 0  ;;  %p159_p3 = pnand %p526_p0, %p158_p2 }
   0x6   : > { %p191_p4 = scmp.lt.s32.totalorder (!%p159_p3), %s635_s12, 1  ;;  %vm330_vm0 = vcmask (!%p159_p3), 588800   ;;  %v211_v0 = vld [vmem:[%s746_s1] sm:$0x1] (!%p159_p3)  ;;  %v645_v1 = vmov (!%p159_p3), 0  }
   0x7   : > { %162 = sbr.rel (%p159_p3) target bundleno = 301 (0x12d), region = 32  ;;  %569 = vmatprep.mubr.msk.bf16.mxu0 (!%p159_p3), %vm330_vm0, %v211_v0  ;;  %604 = vset.pattern.permute.xlu0 (!%p159_p3), %v645_v1  ;;  %v244_v2 = vld [vmem:[%s747_s2] sm:$0x3] (!%p159_p3) }
   0x8   : > { %247 = vperm.xlu0 (!%p159_p3), %604, %v244_v2  }
   0xe   : > { %s754_s12 = smov (!%p191_p4, %s635_s12), 1 }
   0xf   : > { %s551_s20 = sshll.u32 %s754_s12, 7  ;;  %s552_s24 = sshll.u32 %s754_s12, 2 }
  0x10   : > { %s697_s23 = scalar_lea.vmem %s745_s0, %s551_s20  ;;  %s208_s27 = scalar_lea.vmem %s748_s3, %s552_s24 }
  0x11   : > { %v605_v3 = vld [vmem:[%s697_s23 + $0x40] sm:$0xff]   ;;  %v607_v5 = vld [vmem:[%s697_s23 + $0x48] sm:$0xff]   ;;  %v609_v9 = vld [vmem:[%s697_s23 + $0x50] sm:$0xff]  }
  0x12   : > { %v606_v4 = vld [vmem:[%s697_s23] sm:$0xff]   ;;  %571 = vmatprep.subr.msk.bf16.mxu0 %vm330_vm0, %v605_v3  ;;  %v608_v7 = vld [vmem:[%s697_s23 + $0x8] sm:$0xff]   ;;  %v610_v10 = vld [vmem:[%s697_s23 + $0x10] sm:$0xff]  }
  0x13   : > { %v335_v6 = vsel %vm330_vm0, %v606_v4, 0  ;;  %v338_v8 = vsel %vm330_vm0, %v608_v7, 0  ;;  %v341_v11 = vsel %vm330_vm0, %v610_v10, 0  ;;  %v611_v12 = vld [vmem:[%s697_s23 + $0x58] sm:$0xff]   ;;  %v613_v15 = vld [vmem:[%s697_s23 + $0x60] sm:$0xff]   ;;  %v615_v18 = vld [vmem:[%s697_s23 + $0x68] sm:$0xff]  }
  0x14   : > { %554 = vmatpush3.bf16.xpose.msra.mxu0 %v335_v6  ;;  %v612_v13 = vld [vmem:[%s697_s23 + $0x18] sm:$0xff]   ;;  %v614_v16 = vld [vmem:[%s697_s23 + $0x20] sm:$0xff]   ;;  %v616_v19 = vld [vmem:[%s697_s23 + $0x28] sm:$0xff]  }
  0x15   : > { %572 = vmatprep.subr.msk.bf16.mxu0 %vm330_vm0, %v607_v5  ;;  %v344_v14 = vsel %vm330_vm0, %v612_v13, 0  ;;  %v347_v17 = vsel %vm330_vm0, %v614_v16, 0  ;;  %v350_v20 = vsel %vm330_vm0, %v616_v19, 0  ;;  %v617_v21 = vld [vmem:[%s697_s23 + $0x70] sm:$0xff]   ;;  %v619_v24 = vld [vmem:[%s697_s23 + $0x78] sm:$0xff]  }
  0x16   : > { %v618_v22 = vld [vmem:[%s697_s23 + $0x30] sm:$0xff]   ;;  %v620_v25 = vld [vmem:[%s697_s23 + $0x38] sm:$0xff]  }
  0x17   : > { %v353_v23 = vsel %vm330_vm0, %v618_v22, 0  ;;  %v356_v26 = vsel %vm330_vm0, %v620_v25, 0 }
  0x1c   : > { %556 = vmatpush3.bf16.xpose.msra.mxu0 %v338_v8 }
  0x1d   : > { %573 = vmatprep.subr.msk.bf16.mxu0 %vm330_vm0, %v609_v9 }
  0x24   : > { %558 = vmatpush3.bf16.xpose.msra.mxu0 %v341_v11 }
  0x25   : > { %574 = vmatprep.subr.msk.bf16.mxu0 %vm330_vm0, %v611_v12 }
  0x2c   : > { %560 = vmatpush3.bf16.xpose.msra.mxu0 %v344_v14 }
  0x2d   : > { %575 = vmatprep.subr.msk.bf16.mxu0 %vm330_vm0, %v613_v15 }
  0x34   : > { %562 = vmatpush3.bf16.xpose.msra.mxu0 %v347_v17 }
  0x35   : > { %576 = vmatprep.subr.msk.bf16.mxu0 %vm330_vm0, %v615_v18 }
  0x3c   : > { %564 = vmatpush3.bf16.xpose.msra.mxu0 %v350_v20 }
  0x3d   : > { %577 = vmatprep.subr.msk.bf16.mxu0 %vm330_vm0, %v617_v21 }
  0x44   : > { %566 = vmatpush3.bf16.xpose.msra.mxu0 %v353_v23 }
  0x45   : > { %578 = vmatprep.subr.msk.bf16.mxu0 %vm330_vm0, %v619_v24 }
  0x4c   : > { %568 = vmatpush3.bf16.xpose.msra.mxu0 %v356_v26 }
  0x53   : > { %570 = vmatmul.mubr.msk.bf16.vlgmr.msra.gmra.mrb[0].mxu0 %vm330_vm0, %v211_v0 }
  0x87   : > { %v248_v27 = vpop.permute.xlu0 %247 }
 0x126   : > { %v416_v28 = vpop.f32.mrb[0].mxu0 }
 0x127   : > { %v417_v29 = vadd.f32 %v416_v28, %v248_v27  ;;  %v418_v30 = vpop.f32.mrb[1].mxu0 }
 0x128   : > { %v419_v31 = vadd.f32 %v418_v30, %v248_v27  ;;  %v420_v32 = vpop.f32.mrb[2].mxu0 }
 0x129   : > { %v421_v33 = vpop.f32.mrb[3].mxu0 }
 0x12a   : > { %v425_v34 = vcombine.low %v417_v29, %v419_v31 }
 0x12c   : > { %548 = vst.sshfl [vmem:[%s208_s27] sm:$0x33 pattern:$0x76325410] %v425_v34 }
 0x12d PF: > { %s13_s14 = sadd.s32 1, %s643_s14   ;;  %s749_s12 = smov %s639_s13 }
 0x12e   : > { %p10_p5 = scmp.ge.s32.totalorder %s13_s14, 4   ;;  %s750_s13 = smov %s752_s15 }
 0x130   :  { %12 = sbr.rel (!%p10_p5) target bundleno = 2 (0x2), region = 62 }

// kernel: rdc_vanilla_forward.4
= control target key start
LH: loop header
LB: loop body
LE: loop exit
PB: predicated region body
PF: predicated region fallthrough
CT: control target
= control target key end

     0   :  { %s498_s12 = smov 0   ;;  %s526_s0 = inlined_call_operand.vmem [shape: f32[2,32,8], index: 0, kind: input, shape index: {}]   ;;  %s527_s1 = inlined_call_operand.vmem [shape: f32[2,8,64], index: 1, kind: input, shape index: {}]   ;;  %s528_s2 = inlined_call_operand.vmem [shape: f32[2,8,64], index: 2, kind: input, shape index: {}]   ;;  %s529_s3 = inlined_call_operand.vmem [shape: f32[2,4,64], index: 3, kind: output, shape index: {}]  }
   0x1 LB: > { %s430_s13 = sadd.s32 4294967295, %s476_s12   ;;  %p434_p0 = scmp.ge.s32.totalorder %s476_s12, 1  ;;  %s476_s12 = sphi %s498_s12, %s13_s12  }
   0x2   : > { %p155_p1 = scmp.lt.s32.totalorder %s476_s12, 3 }
   0x4   : > { %p156_p2 = pnand %p434_p0, %p155_p1 }
   0x5   : > { %p186_p3 = scmp.lt.s32.totalorder (!%p156_p2), %s430_s13, 1  ;;  %vm208_vm0 = vcmask (!%p156_p2), 64512   ;;  %vm311_vm1 = vcmask (!%p156_p2), 523264   ;;  %vm344_vm2 = vcmask (!%p156_p2), 1041409   ;;  %vm346_vm3 = vcmask (!%p156_p2), 1042434  }
   0x6   : > { %159 = sbr.rel (%p156_p2) target bundleno = 252 (0xfc), region = 32  ;;  %vm348_vm4 = vcmask (!%p156_p2), 1043459   ;;  %vm351_vm5 = vcmask (!%p156_p2), 519168  }
   0xd   : > { %s531_s13 = smov (!%p186_p3, %s430_s13), 1 }
   0xe   : > { %s437_s14 = sshll.u32 %s531_s13, 3  ;;  %s446_s18 = sshll.u32 %s531_s13, 5 }
   0xf   : > { %s194_s17 = scalar_lea.vmem %s527_s1, %s437_s14  ;;  %s190_s21 = scalar_lea.vmem %s526_s0, %s446_s18 }
  0x10   : > { %v207_v0 = vld [vmem:[%s194_s17] sm:$0xff]  ;;  %v205_v2 = vld [vmem:[%s190_s21 + $0x10] sm:$0xff]  ;;  %v204_v3 = vld [vmem:[%s190_s21 + $0x8] sm:$0xff]  ;;  %s198_s24 = scalar_lea.vmem %s528_s2, %s437_s14  ;;  %s439_s25 = sshll.u32 %s531_s13, 2 }
  0x11   : > { %452 = vmatprep.subr.mxu0 %v207_v0  ;;  %460 = vmatprep.subr.mxu1 %v207_v0  ;;  %v203_v1 = vld [vmem:[%s190_s21] sm:$0xff]  ;;  %v206_v4 = vld [vmem:[%s190_s21 + $0x18] sm:$0xff]  ;;  %s202_s28 = scalar_lea.vmem %s529_s3, %s439_s25 }
  0x12   : > { %453 = vmatpush3.msra.mxu0 %v207_v0  ;;  %461 = vmatpush3.msra.mxu1 %v207_v0  ;;  %v306_v5 = vld [vmem:[%s198_s24] sm:$0xff] }
  0x13   : > { %454 = vmatprep.mubr.msk.f32.mxu0 %vm208_vm0, %v203_v1  ;;  %457 = vmatprep.mubr.msk.f32.mxu1 %vm208_vm0, %v205_v2 }
  0x14   : > { %455 = vmatmul.mubr.msk.f32.vlgmr.msra.gmra.mrb[0].mxu0 %vm208_vm0, %v204_v3  ;;  %458 = vmatmul.mubr.msk.f32.vlgmr.msra.gmra.mrb[0].mxu1 %vm208_vm0, %v206_v4 }
  0xe7   : > { %v456_v6 = vpop.f32.mrb[0].mxu0  ;;  %v459_v7 = vpop.f32.mrb[0].mxu1 }
  0xe8   : > { %v308_v8 = vmul.f32 %v456_v6, %v306_v5  ;;  %v310_v9 = vmul.f32 %v459_v7, %v306_v5  ;;  %v287_v10 = vpop.f32.mrb[1].mxu0  ;;  %v297_v11 = vpop.f32.mrb[1].mxu1 }
  0xe9   : > { %v307_v12 = vmul.f32 %v306_v5, %v287_v10  ;;  %v309_v13 = vmul.f32 %v306_v5, %v297_v11 }
  0xea   : > { %v319_v14 = vsel %vm311_vm1, %v308_v8, 0.0  ;;  %v333_v15 = vsel %vm311_vm1, %v310_v9, 0.0 }
  0xeb   : > { %v320_v16 = vrot.slane %v319_v14, 4  ;;  %v334_v17 = vrot.slane %v333_v15, 4  ;;  %v312_v18 = vsel %vm311_vm1, %v307_v12, 0.0  ;;  %v326_v19 = vsel %vm311_vm1, %v309_v13, 0.0 }
  0xec   : > { %v313_v20 = vrot.slane %v312_v18, 4  ;;  %v327_v21 = vrot.slane %v326_v19, 4 }
  0xed   : > { %v321_v22 = vadd.f32 %v320_v16, %v319_v14  ;;  %v335_v23 = vadd.f32 %v334_v17, %v333_v15 }
  0xee   : > { %v314_v24 = vadd.f32 %v313_v20, %v312_v18  ;;  %v328_v25 = vadd.f32 %v327_v21, %v326_v19 }
  0xef   : > { %v322_v26 = vrot.slane %v321_v22, 2  ;;  %v336_v27 = vrot.slane %v335_v23, 2 }
  0xf0   : > { %v315_v28 = vrot.slane %v314_v24, 2  ;;  %v329_v29 = vrot.slane %v328_v25, 2 }
  0xf1   : > { %v323_v30 = vadd.f32 %v322_v26, %v321_v22  ;;  %v337_v31 = vadd.f32 %v336_v27, %v335_v23 }
  0xf2   : > { %v316_v32 = vadd.f32 %v315_v28, %v314_v24  ;;  %v330_v33 = vadd.f32 %v329_v29, %v328_v25 }
  0xf3   : > { %v324_v34 = vrot.slane %v323_v30, 1  ;;  %v338_v35 = vrot.slane %v337_v31, 1 }
  0xf4   : > { %v317_v36 = vrot.slane %v316_v32, 1  ;;  %v331_v37 = vrot.slane %v330_v33, 1 }
  0xf5   : > { %v325_v38 = vadd.f32 %v324_v34, %v323_v30  ;;  %v339_v41 = vadd.f32 %v338_v35, %v337_v31 }
  0xf6   : > { %v318_v39 = vadd.f32 %v317_v36, %v316_v32  ;;  %v332_v40 = vadd.f32 %v331_v37, %v330_v33 }
  0xf8   : > { %v345_v42 = vsel %vm344_vm2, %v325_v38, %v318_v39 }
  0xf9   : > { %v347_v43 = vsel %vm346_vm3, %v332_v40, %v345_v42 }
  0xfa   : > { %v349_v44 = vsel %vm348_vm4, %v339_v41, %v347_v43 }
  0xfb   : > { %352 = vst.msk [vmem:[%s202_s28] sm:$0xf] %vm351_vm5, %v349_v44 }
  0xfc PF: > { %s13_s12 = sadd.s32 1, %s476_s12  }
  0xfd   : > { %p10_p4 = scmp.ge.s32.totalorder %s13_s12, 4  }
  0xff   :  { %12 = sbr.rel (!%p10_p4) target bundleno = 1 (0x1), region = 68 }

// kernel: rdc_vanilla_forward.5
= control target key start
LH: loop header
LB: loop body
LE: loop exit
PB: predicated region body
PF: predicated region fallthrough
CT: control target
= control target key end

     0   :  { %s660_s12 = smov 0   ;;  %s662_s13 = smov 0   ;;  %s739_s0 = inlined_call_operand.vmem [shape: bf16[2,256,72], index: 0, kind: input, shape index: {}]   ;;  %s740_s1 = inlined_call_operand.vmem [shape: bf16[4,72], index: 1, kind: input, shape index: {}]   ;;  %s741_s2 = inlined_call_operand.vmem [shape: f32[4,1], index: 2, kind: input, shape index: {}]   ;;  %s742_s3 = inlined_call_operand.vmem [shape: f32[2,4,256], index: 3, kind: output, shape index: {}]  }
   0x1   :  { %s664_s14 = smov 0  }
   0x2 LB: > { %s25_s15 = sadd.s32 1, %s633_s13  ;;  %p521_p0 = scmp.ge.s32.totalorder %s637_s14, 1  ;;  %s637_s14 = sphi %s664_s14, %s13_s14   ;;  %s633_s13 = sphi %s662_s13, %s744_s13   ;;  %s629_s12 = sphi %s660_s12, %s743_s12  }
   0x3   : > { %p27_p1 = scmp.ge.s32.totalorder %s25_s15, 2  ;;  %p158_p2 = scmp.lt.s32.totalorder %s637_s14, 3 }
   0x5   : > { %s746_s15 = smov (%p27_p1, %s25_s15), 0  ;;  %p159_p3 = pnand %p521_p0, %p158_p2 }
   0x6   : > { %p191_p4 = scmp.lt.s32.totalorder (!%p159_p3), %s629_s12, 1  ;;  %vm330_vm0 = vcmask (!%p159_p3), 588800   ;;  %v211_v0 = vld [vmem:[%s740_s1] sm:$0x3] (!%p159_p3)  ;;  %v639_v1 = vmov (!%p159_p3), 0  }
   0x7   : > { %162 = sbr.rel (%p159_p3) target bundleno = 303 (0x12f), region = 32  ;;  %563 = vmatprep.mubr.msk.bf16.mxu0 (!%p159_p3), %vm330_vm0, %v211_v0  ;;  %598 = vset.pattern.permute.xlu0 (!%p159_p3), %v639_v1  ;;  %v244_v2 = vld [vmem:[%s741_s2] sm:$0xf] (!%p159_p3) }
   0x8   : > { %247 = vperm.xlu0 (!%p159_p3), %598, %v244_v2  }
   0xe   : > { %s748_s12 = smov (!%p191_p4, %s629_s12), 1 }
   0xf   : > { %s545_s20 = sshll.u32 %s748_s12, 7  ;;  %s546_s24 = sshll.u32 %s748_s12, 3 }
  0x10   : > { %s691_s23 = scalar_lea.vmem %s739_s0, %s545_s20  ;;  %s208_s27 = scalar_lea.vmem %s742_s3, %s546_s24 }
  0x11   : > { %v599_v3 = vld [vmem:[%s691_s23 + $0x40] sm:$0xff]   ;;  %v601_v5 = vld [vmem:[%s691_s23 + $0x48] sm:$0xff]   ;;  %v603_v9 = vld [vmem:[%s691_s23 + $0x50] sm:$0xff]  }
  0x12   : > { %v600_v4 = vld [vmem:[%s691_s23] sm:$0xff]   ;;  %565 = vmatprep.subr.msk.bf16.mxu0 %vm330_vm0, %v599_v3  ;;  %v602_v7 = vld [vmem:[%s691_s23 + $0x8] sm:$0xff]   ;;  %v604_v10 = vld [vmem:[%s691_s23 + $0x10] sm:$0xff]  }
  0x13   : > { %v335_v6 = vsel %vm330_vm0, %v600_v4, 0  ;;  %v338_v8 = vsel %vm330_vm0, %v602_v7, 0  ;;  %v341_v11 = vsel %vm330_vm0, %v604_v10, 0  ;;  %v605_v12 = vld [vmem:[%s691_s23 + $0x58] sm:$0xff]   ;;  %v607_v15 = vld [vmem:[%s691_s23 + $0x60] sm:$0xff]   ;;  %v609_v18 = vld [vmem:[%s691_s23 + $0x68] sm:$0xff]  }
  0x14   : > { %548 = vmatpush3.bf16.xpose.msra.mxu0 %v335_v6  ;;  %v606_v13 = vld [vmem:[%s691_s23 + $0x18] sm:$0xff]   ;;  %v608_v16 = vld [vmem:[%s691_s23 + $0x20] sm:$0xff]   ;;  %v610_v19 = vld [vmem:[%s691_s23 + $0x28] sm:$0xff]  }
  0x15   : > { %566 = vmatprep.subr.msk.bf16.mxu0 %vm330_vm0, %v601_v5  ;;  %v344_v14 = vsel %vm330_vm0, %v606_v13, 0  ;;  %v347_v17 = vsel %vm330_vm0, %v608_v16, 0  ;;  %v350_v20 = vsel %vm330_vm0, %v610_v19, 0  ;;  %v611_v21 = vld [vmem:[%s691_s23 + $0x70] sm:$0xff]   ;;  %v613_v24 = vld [vmem:[%s691_s23 + $0x78] sm:$0xff]  }
  0x16   : > { %v612_v22 = vld [vmem:[%s691_s23 + $0x30] sm:$0xff]   ;;  %v614_v25 = vld [vmem:[%s691_s23 + $0x38] sm:$0xff]  }
  0x17   : > { %v353_v23 = vsel %vm330_vm0, %v612_v22, 0  ;;  %v356_v26 = vsel %vm330_vm0, %v614_v25, 0 }
  0x1c   : > { %550 = vmatpush3.bf16.xpose.msra.mxu0 %v338_v8 }
  0x1d   : > { %567 = vmatprep.subr.msk.bf16.mxu0 %vm330_vm0, %v603_v9 }
  0x24   : > { %552 = vmatpush3.bf16.xpose.msra.mxu0 %v341_v11 }
  0x25   : > { %568 = vmatprep.subr.msk.bf16.mxu0 %vm330_vm0, %v605_v12 }
  0x2c   : > { %554 = vmatpush3.bf16.xpose.msra.mxu0 %v344_v14 }
  0x2d   : > { %569 = vmatprep.subr.msk.bf16.mxu0 %vm330_vm0, %v607_v15 }
  0x34   : > { %556 = vmatpush3.bf16.xpose.msra.mxu0 %v347_v17 }
  0x35   : > { %570 = vmatprep.subr.msk.bf16.mxu0 %vm330_vm0, %v609_v18 }
  0x3c   : > { %558 = vmatpush3.bf16.xpose.msra.mxu0 %v350_v20 }
  0x3d   : > { %571 = vmatprep.subr.msk.bf16.mxu0 %vm330_vm0, %v611_v21 }
  0x44   : > { %560 = vmatpush3.bf16.xpose.msra.mxu0 %v353_v23 }
  0x45   : > { %572 = vmatprep.subr.msk.bf16.mxu0 %vm330_vm0, %v613_v24 }
  0x4c   : > { %562 = vmatpush3.bf16.xpose.msra.mxu0 %v356_v26 }
  0x53   : > { %564 = vmatmul.mubr.msk.bf16.vlgmr.msra.gmra.mrb[0].mxu0 %vm330_vm0, %v211_v0 }
  0x87   : > { %v248_v27 = vpop.permute.xlu0 %247 }
 0x126   : > { %v416_v28 = vpop.f32.mrb[0].mxu0 }
 0x127   : > { %v417_v29 = vadd.f32 %v416_v28, %v248_v27  ;;  %v418_v30 = vpop.f32.mrb[1].mxu0 }
 0x128   : > { %v419_v31 = vadd.f32 %v418_v30, %v248_v27  ;;  %v420_v32 = vpop.f32.mrb[2].mxu0 }
 0x129   : > { %v423_v33 = vmax.f32 %v417_v29, 0.0  ;;  %v421_v34 = vpop.f32.mrb[3].mxu0 }
 0x12a   : > { %v424_v35 = vmax.f32 %v419_v31, 0.0 }
 0x12c   : > { %v427_v36 = vcombine.low %v423_v33, %v424_v35 }
 0x12e   : > { %429 = vst [vmem:[%s208_s27] sm:$0xff] %v427_v36 }
 0x12f PF: > { %s13_s14 = sadd.s32 1, %s637_s14   ;;  %s743_s12 = smov %s633_s13 }
 0x130   : > { %p10_p5 = scmp.ge.s32.totalorder %s13_s14, 4   ;;  %s744_s13 = smov %s746_s15 }
 0x132   :  { %12 = sbr.rel (!%p10_p5) target bundleno = 2 (0x2), region = 62 }

</bundles_post_ra>
